<compile_context>
chip_gen: v7x
topology: tpu7x:2x2x1
jax: 0.10.0
libtpu: 0.0.40
codegen_flags: <defaults>
</compile_context>

<pallas_src>
import functools

import jax
import jax.numpy as jnp
from jax.experimental import pallas as pl
from jax.experimental.pallas import tpu as pltpu

LANES = 128  # vreg lane width; last dim of every tile


def linear_kernel(wb_ref, x_ref, o_ref, *, out_features):
    # wb_ref: (2*out_features,) f32 in SMEM -> [w_0..w_{F-1}, b_0..b_{F-1}]
    # x_ref : (TM, 128) f32 lane-dense slab of the flattened (N, 1) input
    # o_ref : (out_features, TM, 128) f32 lane-dense output slab
    x = x_ref[...]                       # single vld stream, reused for all outputs
    for c in range(out_features):        # static unroll (out_features == 2)
        w = wb_ref[c]                    # scalar read from SMEM (scalar slot)
        b = wb_ref[out_features + c]
        # Pure VPU: 1 vmul + 1 vadd per vreg; each output vreg written exactly
        # once with an unmasked, lane-dense store.
        o_ref[c, :, :] = x * w + b


def linear_regression_forward(x, weight, bias, *, tile_rows=512):
    """x: (N, 1) f32; weight: (out_f, 1); bias: (out_f,) -> (N, out_f).

    tile_rows=512 rows-of-128 => ~256 KiB input + ~512 KiB output per tile;
    double-buffered that is <2 MiB VMEM, comfortably inside v5e/v6e (128 MiB)
    and v7x (64 MiB physical / 32 MiB scoped) limits while sitting on the
    measured ~85% HBM-roofline plateau for mem-bound tiled kernels.
    """
    n, in_f = x.shape
    assert in_f == 1, "LinearRegression uses nn.Linear(in_features=1, out_features=2)"
    out_f = weight.shape[0]

    # Scalars for SMEM: [w_0, ..., w_{F-1}, b_0, ..., b_{F-1}]
    wb = jnp.concatenate(
        [weight.reshape(-1), bias.reshape(-1)]).astype(jnp.float32)

    # Lane-dense repack (glue, outside the kernel): flatten (N,1) and pad so the
    # data forms an (M_pad, 128) slab with M_pad a multiple of the tile height.
    m = pl.cdiv(n, LANES)                       # rows of 128 needed
    tm = min(tile_rows, ((m + 7) // 8) * 8)     # tile height, multiple of 8
    m_pad = pl.cdiv(m, tm) * tm
    n_pad = m_pad * LANES
    x_flat = jnp.pad(x.reshape(-1).astype(jnp.float32), (0, n_pad - n))
    x2d = x_flat.reshape(m_pad, LANES)

    grid = (m_pad // tm,)
    kernel = functools.partial(linear_kernel, out_features=out_f)

    out_slab = pl.pallas_call(
        kernel,
        out_shape=jax.ShapeDtypeStruct((out_f, m_pad, LANES), jnp.float32),
        grid=grid,
        in_specs=[
            pl.BlockSpec(memory_space=pltpu.MemorySpace.SMEM),  # w/b scalars
            pl.BlockSpec((tm, LANES), lambda i: (i, 0)),        # x tile
        ],
        out_specs=pl.BlockSpec((out_f, tm, LANES), lambda i: (0, i, 0)),
        compiler_params=pltpu.CompilerParams(
            # Batch axis is embarrassingly parallel -> megacore / 2-TC sharding
            # on v7x; also enables standard double-buffered pipelining.
            dimension_semantics=("parallel",),
        ),
    )(wb, x2d)

    # Glue: lane-dense slab back to torch.nn.Linear layout (N, out_features).
    return out_slab.reshape(out_f, n_pad)[:, :n].T


if __name__ == "__main__":
    key = jax.random.PRNGKey(0)
    k_w, k_b, k_x, k_x2 = jax.random.split(key, 4)

    in_features, out_features = 1, 2
    batch = 8

    # Deterministic init mimicking torch.nn.Linear default:
    # uniform(-1/sqrt(in_features), 1/sqrt(in_features))
    bound = 1.0 / (in_features ** 0.5)
    weight = jax.random.uniform(
        k_w, (out_features, in_features), jnp.float32, -bound, bound)
    bias = jax.random.uniform(
        k_b, (out_features,), jnp.float32, -bound, bound)

    # Small shape consistent with the module (batch=8, in_features=1).
    x = jax.random.normal(k_x, (batch, in_features), jnp.float32)
    y = jax.block_until_ready(linear_regression_forward(x, weight, bias))
    y_ref = x @ weight.T + bias
    assert y.shape == (batch, out_features)
    assert jnp.allclose(y, y_ref, atol=1e-5), "mismatch vs reference (small batch)"

    # Second check exercising multiple grid steps + padding slice-off.
    big = 200_000
    x_big = jax.random.normal(k_x2, (big, in_features), jnp.float32)
    y_big = jax.block_until_ready(linear_regression_forward(x_big, weight, bias))
    y_big_ref = x_big @ weight.T + bias
    assert y_big.shape == (big, out_features)
    assert jnp.allclose(y_big, y_big_ref, atol=1e-5), "mismatch vs reference (tiled)"

    print("KERNEL_OK")
</pallas_src>

<mosaic_0001>
module attributes {stable_mosaic.version = 11 : i64} {
  func.func @linear_kernel(%arg0: i32, %arg1: memref<4xf32, #tpu.memory_space<smem>>, %arg2: memref<8x128xf32, #tpu.memory_space<vmem>>, %arg3: memref<2x8x128xf32, #tpu.memory_space<vmem>>) attributes {dimension_semantics = [#tpu.dimension_semantics<parallel>], iteration_bounds = array<i64: 1>, scalar_prefetch = 0 : i64, scratch_operands = 0 : i64, tpu.core_type = #tpu.core_type<tc>, window_params = [{transform_indices = @transform_0, window_bounds = array<i64: 4>}, {transform_indices = @transform_1, window_bounds = array<i64: 8, 128>}, {transform_indices = @transform_2, window_bounds = array<i64: 2, 8, 128>}]} {
    %c0 = arith.constant 0 : index
    %c0_0 = arith.constant 0 : index
    %0 = vector.load %arg2[%c0, %c0_0] : memref<8x128xf32, #tpu.memory_space<vmem>>, vector<8x128xf32>
    %c0_1 = arith.constant 0 : index
    %1 = memref.load %arg1[%c0_1] : memref<4xf32, #tpu.memory_space<smem>>
    %c2 = arith.constant 2 : index
    %2 = memref.load %arg1[%c2] : memref<4xf32, #tpu.memory_space<smem>>
    %3 = vector.broadcast %1 : f32 to vector<8x128xf32>
    %4 = arith.mulf %0, %3 : vector<8x128xf32>
    %5 = vector.broadcast %2 : f32 to vector<8x128xf32>
    %6 = arith.addf %4, %5 : vector<8x128xf32>
    %c0_2 = arith.constant 0 : index
    %c0_3 = arith.constant 0 : index
    %c0_4 = arith.constant 0 : index
    %7 = vector.load %arg3[%c0_2, %c0_3, %c0_4] : memref<2x8x128xf32, #tpu.memory_space<vmem>>, vector<1x8x128xf32>
    %8 = vector.shape_cast %7 : vector<1x8x128xf32> to vector<8x128xf32>
    %9 = vector.shape_cast %6 : vector<8x128xf32> to vector<1x8x128xf32>
    tpu.vector_store %arg3[%c0_2, %c0_3, %c0_4], %9 {strides = array<i32>} : memref<2x8x128xf32, #tpu.memory_space<vmem>>, vector<1x8x128xf32>,
    %c1 = arith.constant 1 : index
    %10 = memref.load %arg1[%c1] : memref<4xf32, #tpu.memory_space<smem>>
    %c3 = arith.constant 3 : index
    %11 = memref.load %arg1[%c3] : memref<4xf32, #tpu.memory_space<smem>>
    %12 = vector.broadcast %10 : f32 to vector<8x128xf32>
    %13 = arith.mulf %0, %12 : vector<8x128xf32>
    %14 = vector.broadcast %11 : f32 to vector<8x128xf32>
    %15 = arith.addf %13, %14 : vector<8x128xf32>
    %c1_5 = arith.constant 1 : index
    %c0_6 = arith.constant 0 : index
    %c0_7 = arith.constant 0 : index
    %16 = vector.load %arg3[%c1_5, %c0_6, %c0_7] : memref<2x8x128xf32, #tpu.memory_space<vmem>>, vector<1x8x128xf32>
    %17 = vector.shape_cast %16 : vector<1x8x128xf32> to vector<8x128xf32>
    %18 = vector.shape_cast %15 : vector<8x128xf32> to vector<1x8x128xf32>
    tpu.vector_store %arg3[%c1_5, %c0_6, %c0_7], %18 {strides = array<i32>} : memref<2x8x128xf32, #tpu.memory_space<vmem>>, vector<1x8x128xf32>,
    return
  }
  func.func @transform_0(%arg0: i32) -> i32 {
    %c0_i32 = arith.constant 0 : i32
    %c0_i32_0 = arith.constant 0 : i32
    return %c0_i32 : i32
  }
  func.func @transform_1(%arg0: i32) -> (i32, i32) {
    %c0_i32 = arith.constant 0 : i32
    %c0_i32_0 = arith.constant 0 : i32
    return %arg0, %c0_i32 : i32, i32
  }
  func.func @transform_2(%arg0: i32) -> (i32, i32, i32) {
    %c0_i32 = arith.constant 0 : i32
    %c0_i32_0 = arith.constant 0 : i32
    %c0_i32_1 = arith.constant 0 : i32
    return %c0_i32, %arg0, %c0_i32_0 : i32, i32, i32
  }
}

</mosaic_0001>

<bundles_post_ra>
// kernel: tpu_custom_call.1
= control target key start
LH: loop header
LB: loop body
LE: loop exit
PB: predicated region body
PF: predicated region fallthrough
CT: control target
= control target key end

     0   :  { %7 = vsyncpa [#allocation5], 0  ;;  %s193_s0 = inlined_call_operand.hbm [shape: f32[4], index: 0, kind: input, shape index: {}]   ;;  %s194_s1 = inlined_call_operand.hbm [shape: f32[8,128], index: 1, kind: input, shape index: {}]   ;;  %s195_s2 = inlined_call_operand.hbm [shape: f32[2,8,128], index: 2, kind: output, shape index: {}]  }
   0x1   :  { %8 = vsyncpa [#allocation3], 0 }
   0x2   :  { %9 = vsyncpa [#allocation4], 0  ;;  %s77_s11 = scalar_lea.hbm %s193_s0, 16 }
   0x3   :  { %p78_p0 = scmp.ne.s32.totalorder %s193_s0, %s77_s11  ;;  %p81_p1 = scmp.lt.u32.totalorder %s77_s11, %s193_s0 }
   0x5   :  { %p83_p2 = pnand %p81_p1, %p78_p0 }
   0x7   :  { %86 = shalt.err (!%p83_p2)
}
   0x8   :  { %s137_s16 = smov [#allocation2]   ;;  %s138_s19 = smov [#allocation6]  }
   0x9   :  { %17 = dma.hbm_to_smem %s193_s0, 16, %s137_s16, [#allocation5]  }
   0xa   :  { %s24_s20 = sshll.u32 %s138_s19, 4  ;;  %s87_s23 = scalar_lea.hbm %s194_s1, 128  ;;  %s25_s20 = int_to_ptr.vmem [resolvable:$true] %s24_s20 }
   0xb   :  { %p88_p3 = scmp.ne.s32.totalorder %s194_s1, %s87_s23  ;;  %p91_p4 = scmp.lt.u32.totalorder %s87_s23, %s194_s1 }
   0xd   :  { %p93_p5 = pnand %p91_p4, %p88_p3 }
   0xf   :  { %96 = shalt.err (!%p93_p5)
}
  0x10   :  { %s97_s28 = scalar_lea.vmem %s25_s20, 128  ;;  %p102_p7 = scmp.lt.s32.totalorder %s25_s20, %s25_s20 }
  0x11   :  { %p98_p6 = scmp.ne.s32.totalorder %s25_s20, %s97_s28  ;;  %p103_p8 = scmp.lt.s32.totalorder %s97_s28, %s97_s28 }
  0x13   :  { %p104_p9 = por %p103_p8, %p102_p7 }
  0x15   :  { %p105_p10 = pnand %p104_p9, %p98_p6 }
  0x17   :  { %108 = shalt.err (!%p105_p10)
}
  0x18   :  { %27 = dma.hbm_to_vmem [thread:$0]  %s194_s1, 128, %s25_s20, [#allocation3]  }
  0x19   :  { %131 = dma.done.wait [#allocation5], 16  }
  0x1a   :  { %132 = vsyncadd [#allocation5], 4294967280 }
  0x1b   :  { %133 = dma.done.wait [#allocation3], 128  }
  0x1c   :  { %134 = vsyncadd [#allocation3], 4294967168 }
  0x1d   :  { %34 = sfence }
  0x1e   :  { %s36_s30 = sld [smem:[#allocation2]]  ;;  %s69_s3 = sld [smem:[#allocation2 + $0x2]]  ;;  %v35_v0 = vld [vmem:[#allocation6] sm:$0xff] }
  0x1f   :  { %s70_s4 = sld [smem:[#allocation2 + $0x1]]  ;;  %s71_s5 = sld [smem:[#allocation2 + $0x3]] }
  0x20   :  { %s139_s6 = smov [#allocation7]  }
  0x21   :  { %s56_s7 = sshll.u32 %s139_s6, 4  ;;  %s57_s7 = int_to_ptr.vmem [resolvable:$true] %s56_s7 }
  0x22   :  { %s109_s1 = scalar_lea.vmem %s57_s7, 256  ;;  %p114_p12 = scmp.lt.s32.totalorder %s57_s7, %s57_s7 }
  0x23   :  { %p110_p11 = scmp.ne.s32.totalorder %s57_s7, %s109_s1  ;;  %p115_p13 = scmp.lt.s32.totalorder %s109_s1, %s109_s1 }
  0x24   :  { %v38_v1 = vstv %s36_s30  ;;  %v40_v2 = vstv %s69_s3 }
  0x25   :  { %v39_v3 = vmul.f32 %v38_v1, %v35_v0  ;;  %v45_v4 = vstv %s70_s4  ;;  %v47_v5 = vstv %s71_s5  ;;  %p116_p0 = por %p115_p13, %p114_p12 }
  0x26   :  { %v46_v6 = vmul.f32 %v45_v4, %v35_v0 }
  0x27   :  { %v41_v7 = vadd.f32 %v40_v2, %v39_v3  ;;  %p117_p1 = pnand %p116_p0, %p110_p11 }
  0x28   :  { %v48_v8 = vadd.f32 %v47_v5, %v46_v6 }
  0x29   :  { %42 = vst [vmem:[#allocation7] sm:$0xff] %v41_v7 }
  0x2a   :  { %50 = vst [vmem:[#allocation7 + $0x8] sm:$0xff] %v48_v8 }
  0x2b   :  { %120 = shalt.err (!%p117_p1)
}
  0x2c   :  { %s121_s10 = scalar_lea.hbm %s195_s2, 256 }
  0x2d   :  { %p122_p2 = scmp.ne.s32.totalorder %s195_s2, %s121_s10  ;;  %p125_p3 = scmp.lt.u32.totalorder %s121_s10, %s195_s2 }
  0x2f   :  { %p127_p4 = pnand %p125_p3, %p122_p2 }
  0x31   :  { %130 = shalt.err (!%p127_p4)
}
  0x32   :  { %s140_s15 = smov 128   ;;  %s141_s16 = smov 8  }
  0x33   :  { %62 = dma.vmem_to_hbm [thread:$0]  %s57_s7, 256, %s195_s2, [#allocation4], %s140_s15, %s140_s15, %s141_s16  }
  0x34   :  { %135 = dma.done.wait [#allocation4], 256  }
  0x35   :  { %136 = vsyncadd [#allocation4], 4294967040 }
  0x36   :  { %66 = vsyncpa [#allocation3], 1 }
  0x37   :  { %67 = vsyncpa [#allocation4], 1 }
  0x38   :  { %68 = vsyncpa [#allocation5], 1 }

</bundles_post_ra>
